<compile_context>
chip_gen: v7x
topology: tpu7x:2x2x1
jax: 0.10.0
libtpu: 0.0.40
codegen_flags: <defaults>
</compile_context>

<pallas_src>
import functools
import math

import jax
import jax.numpy as jnp
from jax import lax
from jax.experimental import pallas as pl
from jax.experimental.pallas import tpu as pltpu

EMBED_DIM = 128
FEAT_IN = 15          # physical(8) + energy(2) + food(3) + social(2)
EPS = 1e-5            # nn.LayerNorm default eps
MAX_TB = 2048         # max rows per batch tile (VMEM use stays ~10 MB at 2048)
SPLIT_ROWS = 512      # min rows per tile that justify a multi-step grid


def _round_up(x, m):
    return ((x + m - 1) // m) * m


def _pick_tile(batch):
    """Rows per batch tile: multiple of 8, <= MAX_TB.  Large batches get an
    EVEN number of near-equal tiles (balanced across v7x's 2 TensorCores);
    small batches stay single-tile to pay the per-step overhead only once."""
    if batch < 2 * SPLIT_ROWS:
        return min(_round_up(batch, 8), MAX_TB)
    n_tiles = max(2, 2 * math.ceil(batch / (2 * MAX_TB)))   # even tile count
    return _round_up(math.ceil(batch / n_tiles), 8)


def _encoder_kernel(state_ref, w1_ref, w2_ref, bvec_ref, out_ref):
    # state_ref: (TB, 15) f32    w1_ref: (15, 128) f32    w2_ref: (128, 128) bf16
    # bvec_ref:  (4, 128) f32, rows = [b1, b2, gamma, beta]
    x = state_ref[...]
    bvec = bvec_ref[...]
    b1, b2 = bvec[0:1, :], bvec[1:2, :]
    gamma, beta = bvec[2:3, :], bvec[3:4, :]

    # Block-diagonal "specialized encoders" + ReLU (== 4 small Linears + concat).
    # Tiny K (15) matmul kept in f32; it is negligible either way.
    h = jnp.dot(x, w1_ref[...], preferred_element_type=jnp.float32) + b1
    h = jnp.maximum(h, 0.0)

    # feature_combiner Linear(128, 128): bf16 operands on the MXU, f32 accumulate.
    y = jnp.dot(h.astype(jnp.bfloat16), w2_ref[...],
                preferred_element_type=jnp.float32) + b2

    # LayerNorm over the last (128) dim.  Row statistics are computed on the
    # MXU: dot(y, ones(128,128)) puts sum(y_row) in every lane, fusing the
    # reduction with the lane-broadcast and keeping the XLU off the critical
    # path.  Two-pass (centered) variance is numerically safer and free here.
    ones = jnp.ones((EMBED_DIM, EMBED_DIM), jnp.float32)
    inv_n = 1.0 / EMBED_DIM
    mean = jnp.dot(y, ones, preferred_element_type=jnp.float32) * inv_n
    c = y - mean
    var = jnp.dot(c * c, ones, preferred_element_type=jnp.float32) * inv_n
    inv = lax.rsqrt(var + EPS)
    out_ref[...] = (c * inv * gamma + beta).astype(out_ref.dtype)


@functools.partial(jax.jit, static_argnames=("out_dtype",))
def environmental_feature_encoder(state, params, *, out_dtype=jnp.float32):
    """state: (B, 15) or (15,) float32 -> (B, 128) out_dtype.

    params must be pre-packed by init_params:
      w1 (15,128) f32 block-diagonal, w2 (128,128) bf16,
      bvec (4,128) f32 = [b1, b2, gamma, beta].
    """
    if state.ndim == 1:
        state = state[None, :]
    state = state.astype(jnp.float32)
    B = state.shape[0]
    TB = _pick_tile(B)
    grid = pl.cdiv(B, TB)   # ragged last tile: Pallas masks the OOB stores

    w1, w2, bvec = params["w1"], params["w2"], params["bvec"]

    out_itemsize = jnp.dtype(out_dtype).itemsize
    flops = 2 * B * (FEAT_IN * EMBED_DIM + 3 * EMBED_DIM * EMBED_DIM)
    bytes_accessed = (B * FEAT_IN * 4                       # state in
                      + B * EMBED_DIM * out_itemsize        # out
                      + FEAT_IN * EMBED_DIM * 4             # w1 (f32)
                      + EMBED_DIM * EMBED_DIM * 2           # w2 (bf16)
                      + 4 * EMBED_DIM * 4)                  # bias/scale pack

    return pl.pallas_call(
        _encoder_kernel,
        out_shape=jax.ShapeDtypeStruct((B, EMBED_DIM), out_dtype),
        grid_spec=pltpu.PrefetchScalarGridSpec(
            num_scalar_prefetch=0,
            grid=(grid,),
            in_specs=[
                pl.BlockSpec((TB, FEAT_IN), lambda i: (i, 0)),           # state
                pl.BlockSpec((FEAT_IN, EMBED_DIM), lambda i: (0, 0)),    # w1
                pl.BlockSpec((EMBED_DIM, EMBED_DIM), lambda i: (0, 0)),  # w2
                pl.BlockSpec((4, EMBED_DIM), lambda i: (0, 0)),          # b1/b2/gamma/beta
            ],
            out_specs=pl.BlockSpec((TB, EMBED_DIM), lambda i: (i, 0)),
        ),
        compiler_params=pltpu.CompilerParams(
            dimension_semantics=("parallel",),
            vmem_limit_bytes=32 * 1024 * 1024),
        cost_estimate=pl.CostEstimate(
            flops=flops, transcendentals=B * EMBED_DIM,
            bytes_accessed=bytes_accessed),
    )(state, w1, w2, bvec)


def init_params(seed: int = 0):
    """Deterministic init mimicking the PyTorch module.  Returns
    (pre-packed kernel params, raw per-encoder params for the f32 reference)."""
    key = jax.random.PRNGKey(seed)
    ks = jax.random.split(key, 10)
    quarter = EMBED_DIM // 4  # 32

    def linear(kw, kb, fan_in, fan_out):
        bound = 1.0 / (float(fan_in) ** 0.5)   # PyTorch default U(-1/sqrt(in), +)
        w = jax.random.uniform(kw, (fan_in, fan_out), jnp.float32, -bound, bound)
        b = jax.random.uniform(kb, (fan_out,), jnp.float32, -bound, bound)
        return w, b

    w_phys, b_phys = linear(ks[0], ks[1], 8, quarter)
    w_en,   b_en   = linear(ks[2], ks[3], 2, quarter)
    w_food, b_food = linear(ks[4], ks[5], 3, quarter)
    w_soc,  b_soc  = linear(ks[6], ks[7], 2, quarter)
    w2,     b2     = linear(ks[8], ks[9], EMBED_DIM, EMBED_DIM)
    gamma = jnp.ones((EMBED_DIM,), jnp.float32)    # nn.LayerNorm default weight
    beta = jnp.zeros((EMBED_DIM,), jnp.float32)    # nn.LayerNorm default bias

    # Fold the four small Linears into one block-diagonal (15, 128) matrix.
    w1 = jnp.zeros((FEAT_IN, EMBED_DIM), jnp.float32)
    w1 = w1.at[0:8,   0 * quarter:1 * quarter].set(w_phys)
    w1 = w1.at[8:10,  1 * quarter:2 * quarter].set(w_en)
    w1 = w1.at[10:13, 2 * quarter:3 * quarter].set(w_food)
    w1 = w1.at[13:15, 3 * quarter:4 * quarter].set(w_soc)
    b1 = jnp.concatenate([b_phys, b_en, b_food, b_soc])

    # Pre-pack / pre-cast once, outside the per-call path.
    params = {
        "w1": w1,                                              # (15, 128) f32
        "w2": w2.astype(jnp.bfloat16),                         # (128, 128) bf16
        "bvec": jnp.stack([b1, b2, gamma, beta]),              # (4, 128) f32
    }
    raw = dict(w_phys=w_phys, b_phys=b_phys, w_en=w_en, b_en=b_en,
               w_food=w_food, b_food=b_food, w_soc=w_soc, b_soc=b_soc,
               w2=w2, b2=b2, gamma=gamma, beta=beta)
    return params, raw


def _reference_f32(state, raw):
    """Pure-JAX f32 reference matching the PyTorch forward literally."""
    if state.ndim == 1:
        state = state[None, :]
    p = jax.nn.relu(state[:, 0:8] @ raw["w_phys"] + raw["b_phys"])
    e = jax.nn.relu(state[:, 8:10] @ raw["w_en"] + raw["b_en"])
    f = jax.nn.relu(state[:, 10:13] @ raw["w_food"] + raw["b_food"])
    s = jax.nn.relu(state[:, 13:15] @ raw["w_soc"] + raw["b_soc"])
    combined = jnp.concatenate([p, e, f, s], axis=-1)
    y = combined @ raw["w2"] + raw["b2"]
    mean = jnp.mean(y, -1, keepdims=True)
    var = jnp.mean((y - mean) ** 2, -1, keepdims=True)
    return (y - mean) / jnp.sqrt(var + EPS) * raw["gamma"] + raw["beta"]


def _reference_bf16(state, params):
    """Reference emulating the kernel's precision (bf16 second matmul)."""
    if state.ndim == 1:
        state = state[None, :]
    bvec = params["bvec"]
    h = jax.nn.relu(state @ params["w1"] + bvec[0])
    y = jnp.dot(h.astype(jnp.bfloat16), params["w2"],
                preferred_element_type=jnp.float32) + bvec[1]
    mean = jnp.mean(y, -1, keepdims=True)
    var = jnp.mean((y - mean) ** 2, -1, keepdims=True)
    return (y - mean) / jnp.sqrt(var + EPS) * bvec[2] + bvec[3]


if __name__ == "__main__":
    params, raw = init_params(seed=0)

    # Small case from the spec: batch=2, 15 state features.
    state = jax.random.normal(jax.random.PRNGKey(0), (2, FEAT_IN), jnp.float32)
    out = jax.block_until_ready(environmental_feature_encoder(state, params))
    assert out.shape == (2, EMBED_DIM)
    ref_bf = _reference_bf16(state, params)    # same precision path -> tight check
    ref_32 = _reference_f32(state, raw)        # full-f32 PyTorch semantics -> loose check
    assert jnp.allclose(out, ref_bf, atol=5e-3), float(jnp.max(jnp.abs(out - ref_bf)))
    assert jnp.allclose(out, ref_32, atol=5e-2), float(jnp.max(jnp.abs(out - ref_32)))

    # Ragged batch: exercises the partial last block (no wrapper pad/slice).
    state2 = jax.random.normal(jax.random.PRNGKey(1), (37, FEAT_IN), jnp.float32)
    out2 = jax.block_until_ready(environmental_feature_encoder(state2, params))
    assert out2.shape == (37, EMBED_DIM)
    assert jnp.allclose(out2, _reference_f32(state2, raw), atol=5e-2)

    # Multi-tile grid path (even 2-step grid for the v7x megacore split).
    state3 = jax.random.normal(jax.random.PRNGKey(2), (1056, FEAT_IN), jnp.float32)
    out3 = jax.block_until_ready(environmental_feature_encoder(state3, params))
    assert out3.shape == (1056, EMBED_DIM)
    assert jnp.allclose(out3, _reference_f32(state3, raw), atol=5e-2)

    # Optional bf16 output path (halves output HBM traffic for tolerant consumers).
    out_bf16 = jax.block_until_ready(
        environmental_feature_encoder(state, params, out_dtype=jnp.bfloat16))
    assert out_bf16.dtype == jnp.bfloat16
    assert jnp.allclose(out_bf16.astype(jnp.float32), ref_32, atol=7e-2)

    print("KERNEL_OK")
</pallas_src>

<mosaic_0001>
module attributes {stable_mosaic.version = 11 : i64} {
  func.func @_encoder_kernel(%arg0: i32, %arg1: memref<8x15xf32, #tpu.memory_space<vmem>>, %arg2: memref<15x128xf32, #tpu.memory_space<vmem>>, %arg3: memref<128x128xbf16, #tpu.memory_space<vmem>>, %arg4: memref<4x128xf32, #tpu.memory_space<vmem>>, %arg5: memref<8x128xf32, #tpu.memory_space<vmem>>) attributes {dimension_semantics = [#tpu.dimension_semantics<parallel>], iteration_bounds = array<i64: 1>, scalar_prefetch = 0 : i64, scratch_operands = 0 : i64, tpu.core_type = #tpu.core_type<tc>, window_params = [{transform_indices = @transform_0, window_bounds = array<i64: 8, 15>}, {pipeline_mode = #tpu.pipeline_mode<synchronous>, transform_indices = @transform_1, window_bounds = array<i64: 15, 128>}, {pipeline_mode = #tpu.pipeline_mode<synchronous>, transform_indices = @transform_2, window_bounds = array<i64: 128, 128>}, {pipeline_mode = #tpu.pipeline_mode<synchronous>, transform_indices = @transform_3, window_bounds = array<i64: 4, 128>}, {transform_indices = @transform_4, window_bounds = array<i64: 8, 128>}]} {
    %c0 = arith.constant 0 : index
    %c0_0 = arith.constant 0 : index
    %0 = vector.load %arg1[%c0, %c0_0] : memref<8x15xf32, #tpu.memory_space<vmem>>, vector<8x15xf32>
    %c0_1 = arith.constant 0 : index
    %c0_2 = arith.constant 0 : index
    %1 = vector.load %arg4[%c0_1, %c0_2] : memref<4x128xf32, #tpu.memory_space<vmem>>, vector<4x128xf32>
    %2 = vector.extract_strided_slice %1 {offsets = [0, 0], sizes = [1, 128], strides = [1, 1]} : vector<4x128xf32> to vector<1x128xf32>
    %3 = vector.extract_strided_slice %1 {offsets = [1, 0], sizes = [1, 128], strides = [1, 1]} : vector<4x128xf32> to vector<1x128xf32>
    %4 = vector.extract_strided_slice %1 {offsets = [2, 0], sizes = [1, 128], strides = [1, 1]} : vector<4x128xf32> to vector<1x128xf32>
    %5 = vector.extract_strided_slice %1 {offsets = [3, 0], sizes = [1, 128], strides = [1, 1]} : vector<4x128xf32> to vector<1x128xf32>
    %c0_3 = arith.constant 0 : index
    %c0_4 = arith.constant 0 : index
    %6 = vector.load %arg2[%c0_3, %c0_4] : memref<15x128xf32, #tpu.memory_space<vmem>>, vector<15x128xf32>
    %cst = arith.constant dense<0.000000e+00> : vector<8x128xf32>
    %7 = tpu.matmul %0, %6, %cst {dimension_numbers = #tpu.dot_dimension_numbers<[1], [0], [0], [1], [0, 0, 1, 1], [], []>} : vector<8x15xf32>, vector<15x128xf32>, vector<8x128xf32> -> vector<8x128xf32>
    %8 = vector.broadcast %2 : vector<1x128xf32> to vector<8x128xf32>
    %9 = arith.addf %7, %8 : vector<8x128xf32>
    %cst_5 = arith.constant 0.000000e+00 : f32
    %10 = vector.broadcast %cst_5 : f32 to vector<8x128xf32>
    %11 = arith.maximumf %9, %10 : vector<8x128xf32>
    %12 = arith.truncf %11 : vector<8x128xf32> to vector<8x128xbf16>
    %c0_6 = arith.constant 0 : index
    %c0_7 = arith.constant 0 : index
    %13 = vector.load %arg3[%c0_6, %c0_7] : memref<128x128xbf16, #tpu.memory_space<vmem>>, vector<128x128xbf16>
    %cst_8 = arith.constant dense<0.000000e+00> : vector<8x128xf32>
    %14 = tpu.matmul %12, %13, %cst_8 {dimension_numbers = #tpu.dot_dimension_numbers<[1], [0], [0], [1], [0, 0, 1, 1], [], []>} : vector<8x128xbf16>, vector<128x128xbf16>, vector<8x128xf32> -> vector<8x128xf32>
    %15 = vector.broadcast %3 : vector<1x128xf32> to vector<8x128xf32>
    %16 = arith.addf %14, %15 : vector<8x128xf32>
    %cst_9 = arith.constant 1.000000e+00 : f32
    %17 = vector.broadcast %cst_9 : f32 to vector<128x128xf32>
    %cst_10 = arith.constant dense<0.000000e+00> : vector<8x128xf32>
    %18 = tpu.matmul %16, %17, %cst_10 {dimension_numbers = #tpu.dot_dimension_numbers<[1], [0], [0], [1], [0, 0, 1, 1], [], []>} : vector<8x128xf32>, vector<128x128xf32>, vector<8x128xf32> -> vector<8x128xf32>
    %cst_11 = arith.constant 7.812500e-03 : f32
    %19 = vector.broadcast %cst_11 : f32 to vector<8x128xf32>
    %20 = arith.mulf %18, %19 : vector<8x128xf32>
    %21 = arith.subf %16, %20 : vector<8x128xf32>
    %22 = arith.mulf %21, %21 : vector<8x128xf32>
    %cst_12 = arith.constant dense<0.000000e+00> : vector<8x128xf32>
    %23 = tpu.matmul %22, %17, %cst_12 {dimension_numbers = #tpu.dot_dimension_numbers<[1], [0], [0], [1], [0, 0, 1, 1], [], []>} : vector<8x128xf32>, vector<128x128xf32>, vector<8x128xf32> -> vector<8x128xf32>
    %cst_13 = arith.constant 7.812500e-03 : f32
    %24 = vector.broadcast %cst_13 : f32 to vector<8x128xf32>
    %25 = arith.mulf %23, %24 : vector<8x128xf32>
    %cst_14 = arith.constant 9.99999974E-6 : f32
    %26 = vector.broadcast %cst_14 : f32 to vector<8x128xf32>
    %27 = arith.addf %25, %26 : vector<8x128xf32>
    %28 = math.rsqrt %27 : vector<8x128xf32>
    %29 = arith.mulf %21, %28 : vector<8x128xf32>
    %30 = vector.broadcast %4 : vector<1x128xf32> to vector<8x128xf32>
    %31 = arith.mulf %29, %30 : vector<8x128xf32>
    %32 = vector.broadcast %5 : vector<1x128xf32> to vector<8x128xf32>
    %33 = arith.addf %31, %32 : vector<8x128xf32>
    %c0_15 = arith.constant 0 : index
    %c0_16 = arith.constant 0 : index
    %34 = vector.load %arg5[%c0_15, %c0_16] : memref<8x128xf32, #tpu.memory_space<vmem>>, vector<8x128xf32>
    tpu.vector_store %arg5[%c0_15, %c0_16], %33 {strides = array<i32>} : memref<8x128xf32, #tpu.memory_space<vmem>>, vector<8x128xf32>,
    return
  }
  func.func @transform_0(%arg0: i32) -> (i32, i32) {
    %c0_i32 = arith.constant 0 : i32
    %c0_i32_0 = arith.constant 0 : i32
    return %arg0, %c0_i32 : i32, i32
  }
  func.func @transform_1(%arg0: i32) -> (i32, i32) {
    %c0_i32 = arith.constant 0 : i32
    %c0_i32_0 = arith.constant 0 : i32
    %c0_i32_1 = arith.constant 0 : i32
    return %c0_i32, %c0_i32_0 : i32, i32
  }
  func.func @transform_2(%arg0: i32) -> (i32, i32) {
    %c0_i32 = arith.constant 0 : i32
    %c0_i32_0 = arith.constant 0 : i32
    %c0_i32_1 = arith.constant 0 : i32
    return %c0_i32, %c0_i32_0 : i32, i32
  }
  func.func @transform_3(%arg0: i32) -> (i32, i32) {
    %c0_i32 = arith.constant 0 : i32
    %c0_i32_0 = arith.constant 0 : i32
    %c0_i32_1 = arith.constant 0 : i32
    return %c0_i32, %c0_i32_0 : i32, i32
  }
  func.func @transform_4(%arg0: i32) -> (i32, i32) {
    %c0_i32 = arith.constant 0 : i32
    %c0_i32_0 = arith.constant 0 : i32
    return %arg0, %c0_i32 : i32, i32
  }
}

</mosaic_0001>

<bundles_post_ra>
// kernel: environmental_feature_encoder.1
= control target key start
LH: loop header
LB: loop body
LE: loop exit
PB: predicated region body
PF: predicated region fallthrough
CT: control target
= control target key end

     0   :  { %9 = vsyncpa [#allocation3], 0  ;;  %s918_s0 = inlined_call_operand.hbm [shape: f32[2,15], index: 0, kind: input, shape index: {}]   ;;  %s919_s1 = inlined_call_operand.hbm [shape: f32[15,128], index: 1, kind: input, shape index: {}]   ;;  %s920_s2 = inlined_call_operand.hbm [shape: bf16[128,128], index: 2, kind: input, shape index: {}]   ;;  %s921_s3 = inlined_call_operand.hbm [shape: f32[4,128], index: 3, kind: input, shape index: {}]   ;;  %s922_s4 = inlined_call_operand.hbm [shape: f32[2,128], index: 4, kind: output, shape index: {}]  }
   0x1   :  { %10 = vsyncpa [#allocation6], 0 }
   0x2   :  { %11 = vsyncpa [#allocation9], 0 }
   0x3   :  { %12 = vsyncpa [#allocation4], 0 }
   0x4   :  { %17 = vsyncadd [#allocation3], 96  ;;  %s778_s15 = smov [#allocation5]   ;;  %s660_s19 = scalar_lea.hbm %s919_s1, 256 }
   0x5   :  { %s30_s16 = sshll.u32 %s778_s15, 4  ;;  %p661_p0 = scmp.ne.s32.totalorder %s919_s1, %s660_s19  ;;  %s31_s16 = int_to_ptr.vmem [resolvable:$true] %s30_s16 }
   0x6   :  { %p664_p1 = scmp.lt.u32.totalorder %s660_s19, %s919_s1 }
   0x8   :  { %p666_p2 = pnand %p664_p1, %p661_p0 }
   0xa   :  { %669 = shalt.err (!%p666_p2)
}
   0xb   :  { %s670_s24 = scalar_lea.vmem %s31_s16, 256  ;;  %p675_p4 = scmp.lt.s32.totalorder %s31_s16, %s31_s16 }
   0xc   :  { %p671_p3 = scmp.ne.s32.totalorder %s31_s16, %s670_s24  ;;  %p676_p5 = scmp.lt.s32.totalorder %s670_s24, %s670_s24 }
   0xe   :  { %p677_p6 = por %p676_p5, %p675_p4 }
  0x10   :  { %p678_p7 = pnand %p677_p6, %p671_p3 }
  0x12   :  { %681 = shalt.err (!%p678_p7)
}
  0x13   :  { %s779_s25 = smov 128   ;;  %s780_s26 = smov 8  }
  0x14   :  { %36 = dma.hbm_to_vmem [thread:$0]  %s919_s1, 256, %s31_s16, [#allocation6], %s779_s25, %s779_s25, %s780_s26  }
  0x15   :  { %s781_s29 = smov [#allocation2]   ;;  %s682_s7 = scalar_lea.hbm %s918_s0, 32 }
  0x16   :  { %s18_s30 = sshll.u32 %s781_s29, 4  ;;  %p683_p8 = scmp.ne.s32.totalorder %s918_s0, %s682_s7  ;;  %s19_s30 = int_to_ptr.vmem [resolvable:$true] %s18_s30 }
  0x17   :  { %p686_p9 = scmp.lt.u32.totalorder %s682_s7, %s918_s0 }
  0x19   :  { %p688_p10 = pnand %p686_p9, %p683_p8 }
  0x1b   :  { %691 = shalt.err (!%p688_p10)
}
  0x1c   :  { %s692_s12 = scalar_lea.vmem %s19_s30, 32  ;;  %s696_s1 = scalar_lea.vmem %s19_s30, 128 }
  0x1d   :  { %p693_p11 = scmp.ne.s32.totalorder %s19_s30, %s692_s12  ;;  %p697_p12 = scmp.lt.s32.totalorder %s19_s30, %s19_s30 }
  0x1e   :  { %p698_p13 = scmp.lt.s32.totalorder %s696_s1, %s692_s12 }
  0x20   :  { %p699_p0 = por %p698_p13, %p697_p12 }
  0x22   :  { %p700_p1 = pnand %p699_p0, %p693_p11 }
  0x24   :  { %703 = shalt.err (!%p700_p1)
}
  0x25   :  { %s782_s13 = smov 32   ;;  %s783_s14 = smov 2  }
  0x26   :  { %24 = dma.hbm_to_vmem [thread:$0]  %s918_s0, 32, %s19_s30, [#allocation3], %s782_s13, %s782_s13, %s783_s14  }
  0x27   :  { %s784_s17 = smov [#allocation7]   ;;  %s704_s21 = scalar_lea.hbm %s920_s2, 1024 }
  0x28   :  { %s42_s18 = sshll.u32 %s784_s17, 4  ;;  %p705_p2 = scmp.ne.s32.totalorder %s920_s2, %s704_s21  ;;  %s43_s18 = int_to_ptr.vmem [resolvable:$true] %s42_s18 }
  0x29   :  { %p708_p3 = scmp.lt.u32.totalorder %s704_s21, %s920_s2 }
  0x2b   :  { %p710_p4 = pnand %p708_p3, %p705_p2 }
  0x2d   :  { %713 = shalt.err (!%p710_p4)
}
  0x2e   :  { %s714_s26 = scalar_lea.vmem %s43_s18, 1024  ;;  %p719_p6 = scmp.lt.s32.totalorder %s43_s18, %s43_s18 }
  0x2f   :  { %p715_p5 = scmp.ne.s32.totalorder %s43_s18, %s714_s26  ;;  %p720_p7 = scmp.lt.s32.totalorder %s714_s26, %s714_s26 }
  0x31   :  { %p721_p8 = por %p720_p7, %p719_p6 }
  0x33   :  { %p722_p9 = pnand %p721_p8, %p715_p5 }
  0x35   :  { %725 = shalt.err (!%p722_p9)
}
  0x36   :  { %s785_s0 = smov 64   ;;  %s786_s27 = smov 4  }
  0x37   :  { %48 = dma.hbm_to_vmem [thread:$0]  %s920_s2, 1024, %s43_s18, [#allocation6], %s785_s0, %s785_s0, %s786_s27  }
  0x38   :  { %s787_s30 = smov [#allocation8]   ;;  %s726_s8 = scalar_lea.hbm %s921_s3, 64 }
  0x39   :  { %s55_s5 = sshll.u32 %s787_s30, 4  ;;  %p727_p10 = scmp.ne.s32.totalorder %s921_s3, %s726_s8  ;;  %s56_s5 = int_to_ptr.vmem [resolvable:$true] %s55_s5 }
  0x3a   :  { %p730_p11 = scmp.lt.u32.totalorder %s726_s8, %s921_s3 }
  0x3c   :  { %p732_p12 = pnand %p730_p11, %p727_p10 }
  0x3e   :  { %735 = shalt.err (!%p732_p12)
}
  0x3f   :  { %s736_s1 = scalar_lea.vmem %s56_s5, 64  ;;  %p741_p0 = scmp.lt.s32.totalorder %s56_s5, %s56_s5 }
  0x40   :  { %p737_p13 = scmp.ne.s32.totalorder %s56_s5, %s736_s1  ;;  %p742_p1 = scmp.lt.s32.totalorder %s736_s1, %s736_s1 }
  0x42   :  { %p743_p2 = por %p742_p1, %p741_p0 }
  0x44   :  { %p744_p3 = pnand %p743_p2, %p737_p13 }
  0x46   :  { %747 = shalt.err (!%p744_p3)
}
  0x47   :  { %58 = dma.hbm_to_vmem [thread:$0]  %s921_s3, 64, %s56_s5, [#allocation9]  }
  0x48   :  { %770 = dma.done.wait [#allocation3], 128  }
  0x49   :  { %771 = vsyncadd [#allocation3], 4294967168 }
  0x4a   :  { %772 = dma.done.wait [#allocation6], 1280  }
  0x4b   :  { %773 = vsyncadd [#allocation6], 4294966016 }
  0x4c   :  { %774 = dma.done.wait [#allocation9], 64  }
  0x4d   :  { %775 = vsyncadd [#allocation9], 4294967232  ;;  %v788_v0 = vmov 0.0|0.0   ;;  %vm789_vm0 = vmmov 0   ;;  %v790_v1 = vmov 0.0   ;;  %vm84_vm1 = vcmask 1046528  }
  0x4e   :  { %598 = vmatprep.subr.bf16.mxu0 %v788_v0  ;;  %505 = vmatprep.mubr.msk.f32.mxu0 %vm789_vm0, %v790_v1  ;;  %v74_v2 = vld [vmem:[#allocation5] sm:$0xff]  ;;  %v75_v3 = vld [vmem:[#allocation5 + $0x8] sm:$0x7f]  ;;  %vm791_vm2 = vmmov 1   ;;  %v650_v5 = vld [vmem:[#allocation7] sm:$0xff]   ;;  %vm80_vm4 = vcmask 121856   ;;  %v76_v15 = vlaneseq }
  0x4f   :  { %508 = vmatprep.subr.bf16.mxu1 %v790_v1  ;;  %524 = vmatprep.mubr.msk.bf16.mxu1 %vm789_vm0, %v790_v1  ;;  %vm600_vm3 = vmpackc.low %vm84_vm1, %vm791_vm2  ;;  %v599_v4 = vpack.c.bf16 %v75_v3, %v74_v2  ;;  %v72_v6 = vld [vmem:[#allocation2] sm:$0xff]  ;;  %v652_v8 = vld [vmem:[#allocation7 + $0x10] sm:$0xff]   ;;  %v792_v14 = vmov 1.0|1.0  }
  0x50   :  { %509 = vmatpush3.bf16.msra.mxu1 %v650_v5  ;;  %v651_v7 = vld [vmem:[#allocation7 + $0x8] sm:$0xff]   ;;  %v653_v9 = vld [vmem:[#allocation7 + $0x18] sm:$0xff]   ;;  %v654_v10 = vld [vmem:[#allocation7 + $0x20] sm:$0xff]   ;;  %v77_v16 = vshrl.u32 %v76_v15, 7 }
  0x51   :  { %601 = vmatpush3.bf16.msk.msra.mxu0 %vm600_vm3, %v599_v4  ;;  %510 = vmatprep.subr.bf16.mxu1 %v790_v1  ;;  %v655_v11 = vld [vmem:[#allocation7 + $0x28] sm:$0xff]   ;;  %v656_v12 = vld [vmem:[#allocation7 + $0x30] sm:$0xff]   ;;  %v657_v13 = vld [vmem:[#allocation7 + $0x38] sm:$0xff]  }
  0x52   :  { %602 = vmatprep.subr.bf16.mxu0 %v788_v0  ;;  %v78_v17 = vsub.s32 0, %v77_v16  ;;  %v73_v18 = vld [vmem:[#allocation8] sm:$0xf]  ;;  %v178_v25 = vsub.s32 1, %v77_v16  ;;  %v417_v41 = vsub.s32 2, %v77_v16  ;;  %v422_v42 = vsub.s32 3, %v77_v16 }
  0x54   :  { %506 = vmatmul.mubr.msk.f32.vlgmr.msra.gmra.mrb[0].mxu0 %vm80_vm4, %v72_v6  ;;  %511 = vmatpush3.bf16.msra.mxu1 %v651_v7  ;;  %v79_v19 = vrot.slane %v73_v18, %v78_v17  ;;  %v179_v26 = vrot.slane %v73_v18, %v178_v25  ;;  %v418_v43 = vrot.slane %v73_v18, %v417_v41 }
  0x55   :  { %560 = vmatprep.mubr.msk.f32.mxu0 %vm789_vm0, %v790_v1  ;;  %512 = vmatprep.subr.bf16.mxu1 %v790_v1  ;;  %v423_v45 = vrot.slane %v73_v18, %v422_v42 }
  0x56   :  { %603 = vmatpush3.bf16.msra.mxu0 %v792_v14 }
  0x57   :  { %604 = vmatprep.subr.bf16.mxu0 %v788_v0 }
  0x58   :  { %513 = vmatpush3.bf16.msra.mxu1 %v652_v8 }
  0x59   :  { %514 = vmatprep.subr.bf16.mxu1 %v790_v1 }
  0x5a   :  { %605 = vmatpush3.bf16.msra.mxu0 %v792_v14 }
  0x5b   :  { %606 = vmatprep.subr.bf16.mxu0 %v788_v0 }
  0x5c   :  { %515 = vmatpush3.bf16.msra.mxu1 %v653_v9 }
  0x5d   :  { %516 = vmatprep.subr.bf16.mxu1 %v790_v1 }
  0x5e   :  { %607 = vmatpush3.bf16.msra.mxu0 %v792_v14 }
  0x5f   :  { %608 = vmatprep.subr.bf16.mxu0 %v788_v0 }
  0x60   :  { %517 = vmatpush3.bf16.msra.mxu1 %v654_v10 }
  0x61   :  { %518 = vmatprep.subr.bf16.mxu1 %v790_v1 }
  0x62   :  { %609 = vmatpush3.bf16.msra.mxu0 %v792_v14 }
  0x63   :  { %610 = vmatprep.subr.bf16.mxu0 %v788_v0 }
  0x64   :  { %519 = vmatpush3.bf16.msra.mxu1 %v655_v11 }
  0x65   :  { %520 = vmatprep.subr.bf16.mxu1 %v790_v1 }
  0x66   :  { %611 = vmatpush3.bf16.msra.mxu0 %v792_v14 }
  0x67   :  { %612 = vmatprep.subr.bf16.mxu0 %v788_v0 }
  0x68   :  { %521 = vmatpush3.bf16.msra.mxu1 %v656_v12 }
  0x69   :  { %522 = vmatprep.subr.bf16.mxu1 %v790_v1 }
  0x6a   :  { %613 = vmatpush3.bf16.msra.mxu0 %v792_v14 }
  0x6b   :  { %614 = vmatprep.subr.bf16.mxu0 %v788_v0 }
  0x6c   :  { %523 = vmatpush3.bf16.msra.mxu1 %v657_v13 }
  0x6d   :  { %618 = vmatprep.subr.bf16.mxu1 %v788_v0 }
  0x6e   :  { %615 = vmatpush3.bf16.msra.mxu0 %v792_v14 }
  0x6f   :  { %616 = vmatprep.subr.bf16.mxu0 %v788_v0 }
  0x72   :  { %617 = vmatpush3.bf16.msra.mxu0 %v792_v14 }
 0x127   :  { %v154_v20 = vpop.f32.mrb[0].mxu0 }
 0x128   :  { %v155_v21 = vadd.f32 %v154_v20, %v79_v19  ;;  %v507_v22 = vpop.f32.mrb[1].mxu0 }
 0x12a   :  { %v158_v23 = vmax.f32 %v155_v21, 0.0 }
 0x12c   :  { %v159_v24 = vpack.c.bf16 %v158_v23, %v158_v23 }
 0x12e   :  { %525 = vmatmul.mubr.bf16.vlgmr.msra.gmra.mrb[0].mxu1 %v159_v24 }
 0x12f   :  { %619 = vmatpush3.bf16.msra.mxu1 %v792_v14  ;;  %595 = vmatprep.mubr.msk.f32.mxu1 %vm789_vm0, %v790_v1 }
 0x130   :  { %620 = vmatprep.subr.bf16.mxu1 %v788_v0 }
 0x133   :  { %621 = vmatpush3.bf16.msra.mxu1 %v792_v14 }
 0x134   :  { %622 = vmatprep.subr.bf16.mxu1 %v788_v0 }
 0x137   :  { %623 = vmatpush3.bf16.msra.mxu1 %v792_v14 }
 0x138   :  { %624 = vmatprep.subr.bf16.mxu1 %v788_v0 }
 0x13b   :  { %625 = vmatpush3.bf16.msra.mxu1 %v792_v14 }
 0x13c   :  { %626 = vmatprep.subr.bf16.mxu1 %v788_v0 }
 0x13f   :  { %627 = vmatpush3.bf16.msra.mxu1 %v792_v14 }
 0x140   :  { %628 = vmatprep.subr.bf16.mxu1 %v788_v0 }
 0x143   :  { %629 = vmatpush3.bf16.msra.mxu1 %v792_v14 }
 0x144   :  { %630 = vmatprep.subr.bf16.mxu1 %v788_v0 }
 0x147   :  { %631 = vmatpush3.bf16.msra.mxu1 %v792_v14 }
 0x148   :  { %632 = vmatprep.subr.bf16.mxu1 %v788_v0 }
 0x14b   :  { %633 = vmatpush3.bf16.msra.mxu1 %v792_v14 }
 0x201   :  { %v262_v27 = vpop.f32.mrb[0].mxu1 }
 0x202   :  { %v263_v28 = vadd.f32 %v262_v27, %v179_v26  ;;  %v526_v29 = vpop.f32.mrb[1].mxu1 }
 0x203   :  { %v265_v30 = vpop.f32.mrb[2].mxu1 }
 0x204   :  { %v527_v31 = vpop.f32.mrb[3].mxu1  ;;  %561 = vmatmul.mubr.f32.vlgmr.msra.gmra.mrb[2].mxu0 %v263_v28 }
 0x2d7   :  { %v334_v32 = vpop.f32.mrb[2].mxu0 }
 0x2d8   :  { %v338_v33 = vmul.f32 0.0078125, %v334_v32  ;;  %v562_v34 = vpop.f32.mrb[3].mxu0 }
 0x2da   :  { %v339_v35 = vsub.f32 %v263_v28, %v338_v33 }
 0x2dc   :  { %v340_v36 = vmul.f32 %v339_v35, %v339_v35 }
 0x2de   :  { %596 = vmatmul.mubr.f32.vlgmr.msra.gmra.mrb[4].mxu1 %v340_v36 }
 0x3b1   :  { %v407_v37 = vpop.f32.mrb[4].mxu1 }
 0x3b2   :  { %v411_v38 = vmul.f32 0.0078125, %v407_v37  ;;  %v597_v39 = vpop.f32.mrb[5].mxu1 }
 0x3b4   :  { %v412_v40 = vadd.f32 1e-05, %v411_v38 }
 0x3b6   :  { %658 = vrsqrt.f32 %v412_v40 }
 0x3c0   :  { %v659_v44 = vpop.eup %658 }
 0x3c1   :  { %v414_v46 = vmul.f32 %v659_v44, %v339_v35 }
 0x3c3   :  { %v419_v47 = vmul.f32 %v418_v43, %v414_v46 }
 0x3c5   :  { %v424_v48 = vadd.f32 %v423_v45, %v419_v47 }
 0x3c7   :  { %425 = vst [vmem:[#allocation10] sm:$0xff] %v424_v48 }
 0x3c8   :  { %430 = vsyncadd [#allocation4], 96  ;;  %s793_s3 = smov [#allocation10]  }
 0x3c9   :  { %s431_s16 = sshll.u32 %s793_s3, 4  ;;  %s432_s16 = int_to_ptr.vmem [resolvable:$true] %s431_s16 }
 0x3ca   :  { %s748_s17 = scalar_lea.vmem %s432_s16, 32  ;;  %s752_s18 = scalar_lea.vmem %s432_s16, 128 }
 0x3cb   :  { %p749_p4 = scmp.ne.s32.totalorder %s432_s16, %s748_s17  ;;  %p753_p5 = scmp.lt.s32.totalorder %s432_s16, %s432_s16 }
 0x3cc   :  { %p754_p6 = scmp.lt.s32.totalorder %s752_s18, %s748_s17 }
 0x3ce   :  { %p755_p7 = por %p754_p6, %p753_p5 }
 0x3d0   :  { %p756_p8 = pnand %p755_p7, %p749_p4 }
 0x3d2   :  { %759 = shalt.err (!%p756_p8)
}
 0x3d3   :  { %s760_s21 = scalar_lea.hbm %s922_s4, 32 }
 0x3d4   :  { %p761_p9 = scmp.ne.s32.totalorder %s922_s4, %s760_s21  ;;  %p764_p10 = scmp.lt.u32.totalorder %s760_s21, %s922_s4 }
 0x3d6   :  { %p766_p11 = pnand %p764_p10, %p761_p9 }
 0x3d8   :  { %769 = shalt.err (!%p766_p11)
}
 0x3d9   :  { %437 = dma.vmem_to_hbm [thread:$0]  %s432_s16, 32, %s922_s4, [#allocation4], %s782_s13, %s782_s13, %s783_s14  }
 0x3da   :  { %776 = dma.done.wait [#allocation4], 128  }
 0x3db   :  { %777 = vsyncadd [#allocation4], 4294967168 }
 0x3dc   :  { %441 = vsyncpa [#allocation3], 1 }
 0x3dd   :  { %442 = vsyncpa [#allocation6], 1 }
 0x3de   :  { %443 = vsyncpa [#allocation9], 1 }
 0x3df   :  { %444 = vsyncpa [#allocation4], 1 }

</bundles_post_ra>
